<compile_context>
chip_gen: v6e
topology: v6e:2x2x1
jax: 0.10.0
libtpu: 0.0.40
codegen_flags: <defaults>
</compile_context>

<pallas_src>
import functools

import jax
import jax.numpy as jnp
from jax.experimental import pallas as pl
from jax.experimental.pallas import tpu as pltpu

# Scoped-VMEM request and per-grid-step footprint target.  48 MiB is safe on
# every generation (v5e/v6e: 128 MiB VMEM, v7x: 64 MiB per TensorCore); the
# 24 MiB footprint target already includes double-buffering of in/out blocks.
_VMEM_LIMIT_BYTES = 48 * 1024 * 1024
_VMEM_BUDGET_BYTES = 24 * 1024 * 1024


def _round_up(x, m):
    return ((x + m - 1) // m) * m


def _phys_plane_bytes(rows, cols, itemsize):
    """Physical VMEM bytes of a (rows, cols) plane after (sublane,128) tiling."""
    sublane = max(8, 32 // max(1, itemsize))   # 8 for f32, 16 for bf16, 32 for int8
    return _round_up(rows, sublane) * _round_up(cols, 128) * itemsize


def _maxpool_kernel(x_ref, o_ref, pad_ref, hs_ref, *, k, p, s, h, w,
                    h_out, w_out, pad_val):
    """Strided max pool of one (bc, h, w) block -> (bc, h_out, w_out)."""
    hp, wp = h + 2 * p, w + 2 * p
    w1 = wp - k + 1                      # stride-1 output width

    # 1) Fused padding: build the padded plane in VMEM (no HBM pad pass).
    if p > 0:
        pad_ref[...] = jnp.full(pad_ref.shape, pad_val, pad_ref.dtype)
        pad_ref[:, p:p + h, p:p + w] = x_ref[...]
        src = pad_ref
    else:
        src = x_ref

    # 2) Separable max, W direction first: k-1 contiguous lane-shifted taps.
    wmax = src[:, :, 0:w1]
    for kw in range(1, k):
        wmax = jnp.maximum(wmax, src[:, :, kw:kw + w1])

    if s == 1:
        # 3a) H direction: k-1 contiguous sublane-shifted taps; with s == 1
        #     this is already the final result (h_out = hp-k+1, w_out = w1).
        out = wmax[:, 0:h_out, :]
        for kh in range(1, k):
            out = jnp.maximum(out, wmax[:, kh:kh + h_out, :])
        o_ref[...] = out
    else:
        # 3b) H direction with the stride fused: each output row is a max over
        #     a contiguous k-row window (static slices only), staged in VMEM.
        for oh in range(h_out):
            r0 = oh * s
            row = wmax[:, r0:r0 + 1, :]
            for kh in range(1, k):
                row = jnp.maximum(row, wmax[:, r0 + kh:r0 + kh + 1, :])
            hs_ref[:, oh:oh + 1, :] = row
        # 4) W stride fused as w_out static single-column copies (no strided /
        #    gather loads -> lowers unconditionally, any dtype).
        for ow in range(w_out):
            o_ref[:, :, ow:ow + 1] = hs_ref[:, :, ow * s:ow * s + 1]


def ws_max_pool2d(x, kernel_size, padding, stride=1):
    """Pallas implementation of WSMaxPool2d.forward for NCHW x."""
    n, c, h, w = x.shape
    k, p, s = int(kernel_size), int(padding), int(stride)

    hp, wp = h + 2 * p, w + 2 * p
    h_out = (hp - k) // s + 1
    w_out = (wp - k) // s + 1
    w1 = wp - k + 1

    if jnp.issubdtype(x.dtype, jnp.floating):
        pad_val = float("-inf")
    else:
        pad_val = int(jnp.iinfo(x.dtype).min)

    nc = n * c
    xr = x.reshape(nc, h, w)        # leading-dim merge only: no data movement

    # --- block size along N*C from the *physical* VMEM footprint ------------
    itemsize = x.dtype.itemsize
    per_bc = (2 * _phys_plane_bytes(h, w, itemsize)            # input, dbl-buf
              + 2 * _phys_plane_bytes(h_out, w_out, itemsize)  # output, dbl-buf
              + _phys_plane_bytes(hp, w1, itemsize))           # wmax temporary
    if p > 0:
        per_bc += _phys_plane_bytes(hp, wp, itemsize)          # padded-plane scratch
    if s > 1:
        per_bc += _phys_plane_bytes(h_out, w1, itemsize)       # H-reduced scratch

    max_bc_mem = max(1, _VMEM_BUDGET_BYTES // per_bc)
    min_blocks = 2 if nc >= 2 else 1            # keep both v7x TensorCores busy
    bc_cap = max(1, min(max_bc_mem, nc // min_blocks))
    bc = 1
    for d in range(bc_cap, 0, -1):              # largest divisor of nc <= cap
        if nc % d == 0:
            bc = d
            break
    num_blocks = nc // bc                       # exact: no leading-axis padding

    scratch_shapes = [
        pltpu.VMEM((bc, hp, wp), x.dtype) if p > 0 else pltpu.VMEM((8, 128), x.dtype),
        pltpu.VMEM((bc, h_out, w1), x.dtype) if s > 1 else pltpu.VMEM((8, 128), x.dtype),
    ]

    kernel = functools.partial(_maxpool_kernel, k=k, p=p, s=s, h=h, w=w,
                               h_out=h_out, w_out=w_out, pad_val=pad_val)

    out = pl.pallas_call(
        kernel,
        out_shape=jax.ShapeDtypeStruct((nc, h_out, w_out), x.dtype),
        grid_spec=pltpu.PrefetchScalarGridSpec(
            num_scalar_prefetch=0,
            grid=(num_blocks,),
            in_specs=[pl.BlockSpec((bc, h, w), lambda i: (i, 0, 0))],
            out_specs=pl.BlockSpec((bc, h_out, w_out), lambda i: (i, 0, 0)),
            scratch_shapes=scratch_shapes,
        ),
        compiler_params=pltpu.CompilerParams(
            dimension_semantics=("parallel",),
            vmem_limit_bytes=_VMEM_LIMIT_BYTES,
        ),
    )(xr)

    return out.reshape(n, c, h_out, w_out)


def _ref_max_pool2d(x, kernel_size, padding, stride):
    """Pure-JAX reference (matches F.max_pool2d, ceil_mode=False), float only."""
    return jax.lax.reduce_window(
        x,
        -jnp.inf,
        jax.lax.max,
        window_dimensions=(1, 1, kernel_size, kernel_size),
        window_strides=(1, 1, stride, stride),
        padding=((0, 0), (0, 0), (padding, padding), (padding, padding)),
    )


if __name__ == "__main__":
    key = jax.random.PRNGKey(0)
    x = jax.random.normal(key, (2, 4, 16, 16), dtype=jnp.float32)
    kernel_size, padding = 3, 1

    # stride == 1 (module forward default)
    y1 = ws_max_pool2d(x, kernel_size, padding, stride=1)
    jax.block_until_ready(y1)
    r1 = _ref_max_pool2d(x, kernel_size, padding, 1)
    assert y1.shape == (2, 4, 16, 16)
    assert y1.dtype == x.dtype
    assert bool(jnp.allclose(y1, r1))

    # stride == 2 (reduction-cell usage)
    y2 = ws_max_pool2d(x, kernel_size, padding, stride=2)
    jax.block_until_ready(y2)
    r2 = _ref_max_pool2d(x, kernel_size, padding, 2)
    assert y2.shape == (2, 4, 8, 8)
    assert y2.dtype == x.dtype
    assert bool(jnp.allclose(y2, r2))

    print("KERNEL_OK")
</pallas_src>

<mosaic_0001>
module attributes {stable_mosaic.version = 11 : i64} {
  func.func @_maxpool_kernel(%arg0: i32, %arg1: memref<4x16x16xf32, #tpu.memory_space<vmem>>, %arg2: memref<4x16x16xf32, #tpu.memory_space<vmem>>, %arg3: memref<4x18x18xf32, #tpu.memory_space<vmem>>, %arg4: memref<8x128xf32, #tpu.memory_space<vmem>>) attributes {dimension_semantics = [#tpu.dimension_semantics<parallel>], iteration_bounds = array<i64: 2>, scalar_prefetch = 0 : i64, scratch_operands = 2 : i64, tpu.core_type = #tpu.core_type<tc>, window_params = [{transform_indices = @transform_0, window_bounds = array<i64: 4, 16, 16>}, {transform_indices = @transform_1, window_bounds = array<i64: 4, 16, 16>}]} {
    %cst = arith.constant 0xFF800000 : f32
    %0 = vector.broadcast %cst : f32 to vector<4x18x18xf32>
    %c0 = arith.constant 0 : index
    %c0_0 = arith.constant 0 : index
    %c0_1 = arith.constant 0 : index
    %1 = vector.load %arg3[%c0, %c0_0, %c0_1] : memref<4x18x18xf32, #tpu.memory_space<vmem>>, vector<4x18x18xf32>
    tpu.vector_store %arg3[%c0, %c0_0, %c0_1], %0 {strides = array<i32>} : memref<4x18x18xf32, #tpu.memory_space<vmem>>, vector<4x18x18xf32>,
    %c0_2 = arith.constant 0 : index
    %c0_3 = arith.constant 0 : index
    %c0_4 = arith.constant 0 : index
    %2 = vector.load %arg1[%c0_2, %c0_3, %c0_4] : memref<4x16x16xf32, #tpu.memory_space<vmem>>, vector<4x16x16xf32>
    %c0_5 = arith.constant 0 : index
    %c1 = arith.constant 1 : index
    %c1_6 = arith.constant 1 : index
    %3 = vector.load %arg3[%c0_5, %c1, %c1_6] : memref<4x18x18xf32, #tpu.memory_space<vmem>>, vector<4x16x16xf32>
    tpu.vector_store %arg3[%c0_5, %c1, %c1_6], %2 {strides = array<i32>} : memref<4x18x18xf32, #tpu.memory_space<vmem>>, vector<4x16x16xf32>,
    %c0_7 = arith.constant 0 : index
    %c0_8 = arith.constant 0 : index
    %c0_9 = arith.constant 0 : index
    %4 = vector.load %arg3[%c0_7, %c0_8, %c0_9] : memref<4x18x18xf32, #tpu.memory_space<vmem>>, vector<4x18x16xf32>
    %c0_10 = arith.constant 0 : index
    %c0_11 = arith.constant 0 : index
    %c1_12 = arith.constant 1 : index
    %5 = vector.load %arg3[%c0_10, %c0_11, %c1_12] : memref<4x18x18xf32, #tpu.memory_space<vmem>>, vector<4x18x16xf32>
    %6 = arith.maximumf %4, %5 : vector<4x18x16xf32>
    %c0_13 = arith.constant 0 : index
    %c0_14 = arith.constant 0 : index
    %c2 = arith.constant 2 : index
    %7 = vector.load %arg3[%c0_13, %c0_14, %c2] : memref<4x18x18xf32, #tpu.memory_space<vmem>>, vector<4x18x16xf32>
    %8 = arith.maximumf %6, %7 : vector<4x18x16xf32>
    %9 = vector.extract_strided_slice %8 {offsets = [0, 0, 0], sizes = [4, 16, 16], strides = [1, 1, 1]} : vector<4x18x16xf32> to vector<4x16x16xf32>
    %10 = vector.extract_strided_slice %8 {offsets = [0, 1, 0], sizes = [4, 16, 16], strides = [1, 1, 1]} : vector<4x18x16xf32> to vector<4x16x16xf32>
    %11 = arith.maximumf %9, %10 : vector<4x16x16xf32>
    %12 = vector.extract_strided_slice %8 {offsets = [0, 2, 0], sizes = [4, 16, 16], strides = [1, 1, 1]} : vector<4x18x16xf32> to vector<4x16x16xf32>
    %13 = arith.maximumf %11, %12 : vector<4x16x16xf32>
    %c0_15 = arith.constant 0 : index
    %c0_16 = arith.constant 0 : index
    %c0_17 = arith.constant 0 : index
    %14 = vector.load %arg2[%c0_15, %c0_16, %c0_17] : memref<4x16x16xf32, #tpu.memory_space<vmem>>, vector<4x16x16xf32>
    tpu.vector_store %arg2[%c0_15, %c0_16, %c0_17], %13 {strides = array<i32>} : memref<4x16x16xf32, #tpu.memory_space<vmem>>, vector<4x16x16xf32>,
    return
  }
  func.func @transform_0(%arg0: i32) -> (i32, i32, i32) {
    %c0_i32 = arith.constant 0 : i32
    %c0_i32_0 = arith.constant 0 : i32
    %c0_i32_1 = arith.constant 0 : i32
    return %arg0, %c0_i32, %c0_i32_0 : i32, i32, i32
  }
  func.func @transform_1(%arg0: i32) -> (i32, i32, i32) {
    %c0_i32 = arith.constant 0 : i32
    %c0_i32_0 = arith.constant 0 : i32
    %c0_i32_1 = arith.constant 0 : i32
    return %arg0, %c0_i32, %c0_i32_0 : i32, i32, i32
  }
}

</mosaic_0001>

<bundles_post_ra>
// kernel: tpu_custom_call.1
= control target key start
LH: loop header
LB: loop body
LE: loop exit
PB: predicated region body
PF: predicated region fallthrough
CT: control target
= control target key end

     0   :  { %6 = vsyncpa [#allocation5], 0  ;;  %s957_s0 = inlined_call_operand.hbm [shape: f32[8,16,16], index: 0, kind: input, shape index: {}]   ;;  %s958_s1 = inlined_call_operand.hbm [shape: f32[8,16,16], index: 1, kind: output, shape index: {}]  }
   0x1   :  { %8 = vsyncpa [#allocation5 + $0x1], 0 }
   0x2   :  { %9 = vsyncpa [#allocation6], 0 }
   0x3   :  { %11 = vsyncpa [#allocation6 + $0x1], 0  ;;  %s692_s6 = smov 0   ;;  %s694_s7 = smov 0  }
   0x4   :  { %s696_s8 = smov 0   ;;  %s698_s9 = smov 0  }
   0x5 LB: > { %s713_s10 = sadd.s32 4294967295, %s670_s9   ;;  %s504_s11 = sadd.s32 4294967294, %s670_s9   ;;  %s670_s9 = sphi %s698_s9, %s973_s9   ;;  %s666_s8 = sphi %s696_s8, %s972_s8   ;;  %s662_s7 = sphi %s694_s7, %s971_s7   ;;  %s658_s6 = sphi %s692_s6, %s970_s6  }
   0x6   : > { %s717_s12 = sadd.s32 1, %s670_s9   ;;  %s24_s13 = sadd.s32 1, %s666_s8 }
   0x7   : > { %s21_s14 = ssub.s32 %s670_s9, %s717_s12  ;;  %p31_p0 = scmp.ne.s32.totalorder %s666_s8, %s662_s7 }
   0x8   : > { %p22_p1 = scmp.eq.s32.totalorder %s21_s14, 0  ;;  %p32_p2 = scmp.eq.s32.totalorder %s670_s9, 0 }
   0x9   : > { %p37_p3 = scmp.ne.s32.totalorder %s662_s7, %s658_s6  ;;  %p38_p4 = scmp.eq.s32.totalorder %s713_s10, 0 }
   0xa   : > { %s729_s15 = scalar_select %p22_p1, %s666_s8, %s24_s13  }
   0xb   : > { %p731_p5 = por %p32_p2, %p31_p0  ;;  %p735_p6 = por %p38_p4, %p37_p3 }
   0xc   : > { %p61_p7 = scmp.eq.s32.totalorder %s713_s10, 1  ;;  %p67_p8 = scmp.eq.s32.totalorder %s504_s11, 1 }
   0xd   : > { %s962_s17 = scalar_select %p735_p6, 1, 0 }
   0xe   : > { %p536_p10 = scmp.lt.s32.totalorder %s670_s9, 2  ;;  %p742_p11 = por %p61_p7, %p31_p0 }
   0xf   : > { %p746_p12 = por %p67_p8, %p37_p3  ;;  %s87_s20 = sand.u32 1, %s666_s8  }
  0x10   : > { %s963_s18 = scalar_select %p742_p11, 1, 0 }
  0x11   : > { %s964_s19 = scalar_select %p746_p12, 1, 0 }
  0x12   : > { %s521_s21 = sshll.u32 %s670_s9, 10  ;;  %s507_s22 = sshll.u32 %s87_s20, 6 }
  0x13   : > { %s755_s25 = scalar_lea.hbm %s957_s0, %s521_s21  ;;  %s91_s26 = scalar_lea.vmem [#allocation4], %s507_s22 }
  0x14   : > { %s99_s27 = sshll.u32 %s91_s26, 4  ;;  %p759_p13 = pnand %p536_p10, %p731_p5  ;;  %s763_s27 = int_to_ptr.vmem [resolvable:$true] %s99_s27 }
  0x15   : > { %s765_s29 = scalar_lea.sflag [#allocation5], %s87_s20  ;;  %s578_s30 = scalar_lea.hbm %s755_s25, 1024 }
  0x16   : > { %p579_p0 = scmp.ne.s32.totalorder %s755_s25, %s578_s30  ;;  %p580_p1 = pneg %p759_p13 }
  0x17   : > { %s583_s4 = scalar_lea.hbm %s957_s0, 2048  ;;  %p584_p4 = scmp.lt.s32.totalorder %s755_s25, %s957_s0 }
  0x18   : > { %p581_p2 = pnand %p580_p1, %p579_p0  ;;  %p585_p5 = scmp.lt.s32.totalorder %s583_s4, %s578_s30 }
  0x1a   : > { %p582_p3 = pneg %p581_p2  ;;  %p586_p7 = por %p585_p5, %p584_p4 }
  0x1c   : > { %p587_p8 = pnand %p586_p7, %p582_p3 }
  0x1e   : > { %590 = shalt.err (!%p587_p8)
}
  0x1f   : > { %s591_s13 = scalar_lea.vmem %s763_s27, 1024  ;;  %s672_s14 = smov [#allocation4]  }
  0x20   : > { %p592_p10 = scmp.ne.s32.totalorder %s763_s27, %s591_s13  ;;  %s596_s16 = sshll.u32 %s672_s14, 4  ;;  %s597_s16 = int_to_ptr.vmem [resolvable:$false] %s596_s16 }
  0x21   : > { %s598_s20 = scalar_lea.vmem %s597_s16, 2048  ;;  %p599_p2 = scmp.lt.s32.totalorder %s763_s27, %s597_s16 }
  0x22   : > { %p594_p9 = pnand %p592_p10, %p580_p1  ;;  %p600_p12 = scmp.lt.s32.totalorder %s598_s20, %s591_s13 }
  0x24   : > { %p595_p0 = pneg %p594_p9  ;;  %p601_p11 = por %p600_p12, %p599_p2 }
  0x26   : > { %p602_p6 = pnand %p601_p11, %p595_p0 }
  0x28   : > { %605 = shalt.err (!%p602_p6)
}
  0x29   : > { %s673_s21 = smov 128   ;;  %s674_s22 = smov 8  }
  0x2a   : > { %531 = dma.hbm_to_vmem [thread:$0]  (!%p759_p13), %s755_s25, 1024, %s763_s27, %s765_s29, %s673_s21, %s673_s21, %s674_s22  }
  0x2b   : > { %p511_p9 = scmp.ge.s32.totalorder %s670_s9, 1  ;;  %p107_p1 = scmp.lt.s32.totalorder %s670_s9, 3 }
  0x2d   : > { %p108_p3 = pnand %p511_p9, %p107_p1 }
  0x2e   : > { %s789_s23 = sand.u32 (!%p108_p3), 1, %s662_s7   ;;  %p966_p6 = scmp.ne.s32.totalorder (!%p108_p3), %s962_s17, 0 }
  0x2f   : > { %111 = sbr.rel (%p108_p3) target bundleno = 364 (0x16c), region = 24  ;;  %s512_s24 = sshll.u32 (!%p108_p3), %s789_s23, 6 }
  0x30   : > { %s114_s26 = scalar_lea.sflag (!%p108_p3), [#allocation5], %s789_s23  ;;  %s795_s30 = scalar_lea.vmem (!%p108_p3), [#allocation4], %s512_s24 }
  0x34   : > { %649 = dma.done.wait (%p966_p6), %s114_s26, 1024  }
  0x35   : > { %651 = vsyncadd (%p966_p6), %s114_s26, 4294966272  ;;  %vm138_vm0 = vcmask 146432   ;;  %vm141_vm1 = vcmask 140288   ;;  %v675_v0 = vmov -inf   ;;  %v152_v1 = vld [vmem:[%s795_s30] sm:$0xff]  ;;  %v154_v2 = vld [vmem:[%s795_s30 + $0x10] sm:$0xff] }
  0x36   : > { %139 = vst.msk [vmem:[#allocation2] sm:$0xff] %vm138_vm0, %v675_v0  ;;  %140 = vst.msk [vmem:[#allocation2 + $0x8] sm:$0xff] %vm138_vm0, %v675_v0  ;;  %s676_s17 = smov 1   ;;  %v153_v3 = vld [vmem:[%s795_s30 + $0x8] sm:$0xff]  ;;  %v155_v4 = vld [vmem:[%s795_s30 + $0x18] sm:$0xff]  ;;  %vm192_vm2 = vcmask 138248  }
  0x37   : > { %143 = vst.msk [vmem:[#allocation2 + $0x18] sm:$0xff] %vm138_vm0, %v675_v0  ;;  %144 = vst.msk [vmem:[#allocation2 + $0x20] sm:$0xff] %vm138_vm0, %v675_v0  ;;  %168 = vrot.lane.b32.xlu0 %v152_v1, %s676_s17  ;;  %172 = vrot.lane.b32.xlu1 %v154_v2, %s676_s17  ;;  %v156_v5 = vld [vmem:[%s795_s30 + $0x20] sm:$0xff]  ;;  %v157_v6 = vld [vmem:[%s795_s30 + $0x28] sm:$0xff]  ;;  %s677_s25 = smov 127   ;;  %s678_s27 = smov 126  }
  0x38   : > { %146 = vst.msk [vmem:[#allocation2 + $0x30] sm:$0xff] %vm138_vm0, %v675_v0  ;;  %147 = vst.msk [vmem:[#allocation2 + $0x38] sm:$0xff] %vm138_vm0, %v675_v0  ;;  %v159_v7 = vld [vmem:[%s795_s30 + $0x38] sm:$0xff]  ;;  %v158_v8 = vld [vmem:[%s795_s30 + $0x30] sm:$0xff]  ;;  %vm333_vm3 = vcmask 1046528   ;;  %vm370_vm4 = vcmask 1045504  }
  0x39   : > { %149 = vst.msk [vmem:[#allocation2 + $0x48] sm:$0xff] %vm138_vm0, %v675_v0  ;;  %150 = vst.msk [vmem:[#allocation2 + $0x50] sm:$0xff] %vm138_vm0, %v675_v0  ;;  %vm407_vm5 = vcmask 130048   ;;  %s870_s28 = scalar_lea.vmem [#allocation7], %s512_s24  ;;  %s523_s29 = sshll.u32 %s713_s10, 10 }
  0x3a   : > { %142 = vst.msk [vmem:[#allocation2 + $0x10] sm:$0x3] %vm141_vm1, %v675_v0  ;;  %145 = vst.msk [vmem:[#allocation2 + $0x28] sm:$0x3] %vm141_vm1, %v675_v0  ;;  %s431_s2 = sshll.u32 %s870_s28, 4  ;;  %s908_s5 = scalar_lea.hbm %s958_s1, %s523_s29  ;;  %s910_s2 = int_to_ptr.vmem [resolvable:$true] %s431_s2 }
  0x3b   : > { %148 = vst.msk [vmem:[#allocation2 + $0x40] sm:$0x3] %vm141_vm1, %v675_v0  ;;  %151 = vst.msk [vmem:[#allocation2 + $0x58] sm:$0x3] %vm141_vm1, %v675_v0  ;;  %170 = vrot.lane.b32.xlu0 %v153_v3, %s676_s17  ;;  %174 = vrot.lane.b32.xlu1 %v155_v4, %s676_s17  ;;  %s417_s10 = scalar_lea.sflag [#allocation6], %s789_s23  ;;  %s606_s11 = scalar_lea.vmem %s910_s2, 1024 }
  0x3c   : > { %p607_p11 = scmp.ne.s32.totalorder %s910_s2, %s606_s11  ;;  %p967_p12 = scmp.ne.s32.totalorder %s963_s18, 0 }
  0x3d   : > { %s679_s13 = smov [#allocation7]  }
  0x3e   : > { %p608_p13 = pnand %p607_p11, %p967_p12  ;;  %s610_s14 = sshll.u32 %s679_s13, 4  ;;  %s611_s14 = int_to_ptr.vmem [resolvable:$false] %s610_s14 }
  0x3f   : > { %176 = vrot.lane.b32.xlu0 %v156_v5, %s676_s17  ;;  %178 = vrot.lane.b32.xlu1 %v157_v6, %s676_s17  ;;  %s612_s16 = scalar_lea.vmem %s611_s14, 2048  ;;  %p613_p5 = scmp.lt.s32.totalorder %s910_s2, %s611_s14 }
  0x40   : > { %p609_p4 = pneg %p608_p13  ;;  %p614_p7 = scmp.lt.s32.totalorder %s612_s16, %s606_s11 }
  0x42   : > { %p615_p8 = por %p614_p7, %p613_p5 }
  0x43   : > { %182 = vrot.lane.b32.xlu1 %v159_v7, %s676_s17  ;;  %180 = vrot.lane.b32.xlu0 %v158_v8, %s676_s17 }
  0x44   : > { %p616_p10 = pnand %p615_p8, %p609_p4 }
  0xa9   : > { %v169_v9 = vpop.permute.xlu0 %168  ;;  %v173_v10 = vpop.permute.xlu1 %172 }
  0xaa   : > { %193 = vst.msk [vmem:[#allocation2 + $0x1] sm:$0xff] %vm192_vm2, %v169_v9  ;;  %195 = vst.msk [vmem:[#allocation2 + $0x19] sm:$0xff] %vm192_vm2, %v173_v10 }
  0xad   : > { %v171_v11 = vpop.permute.xlu0 %170  ;;  %v175_v12 = vpop.permute.xlu1 %174 }
  0xae   : > { %194 = vst.msk [vmem:[#allocation2 + $0x9] sm:$0xff] %vm192_vm2, %v171_v11  ;;  %196 = vst.msk [vmem:[#allocation2 + $0x21] sm:$0xff] %vm192_vm2, %v175_v12 }
  0xb1   : > { %v201_v13 = vld [vmem:[#allocation2] sm:$0xff]  ;;  %v177_v14 = vpop.permute.xlu0 %176  ;;  %v179_v15 = vpop.permute.xlu1 %178  ;;  %v817_v20 = vld [vmem:[#allocation2 + $0x18] sm:$0xff] }
  0xb2   : > { %225 = vrot.lane.b32.xlu0 %v201_v13, %s677_s25  ;;  %197 = vst.msk [vmem:[#allocation2 + $0x31] sm:$0xff] %vm192_vm2, %v177_v14  ;;  %198 = vst.msk [vmem:[#allocation2 + $0x39] sm:$0xff] %vm192_vm2, %v179_v15 }
  0xb5   : > { %v202_v16 = vld [vmem:[#allocation2 + $0x8] sm:$0xff]  ;;  %v203_v17 = vld [vmem:[#allocation2 + $0x10] sm:$0x3]  ;;  %v183_v18 = vpop.permute.xlu1 %182  ;;  %v181_v19 = vpop.permute.xlu0 %180  ;;  %v819_v21 = vld [vmem:[#allocation2 + $0x20] sm:$0xff] }
  0xb6   : > { %227 = vrot.lane.b32.xlu1 %v202_v16, %s677_s25  ;;  %229 = vrot.lane.b32.xlu0 %v203_v17, %s677_s25  ;;  %200 = vst.msk [vmem:[#allocation2 + $0x51] sm:$0xff] %vm192_vm2, %v183_v18  ;;  %199 = vst.msk [vmem:[#allocation2 + $0x49] sm:$0xff] %vm192_vm2, %v181_v19  ;;  %v823_v22 = vld [vmem:[#allocation2 + $0x28] sm:$0x3] }
  0xb9   : > { %v825_v23 = vld [vmem:[#allocation2 + $0x30] sm:$0xff]  ;;  %v829_v24 = vld [vmem:[#allocation2 + $0x38] sm:$0xff]  ;;  %v831_v25 = vld [vmem:[#allocation2 + $0x40] sm:$0x3] }
  0xba   : > { %231 = vrot.lane.b32.xlu1 %v817_v20, %s677_s25  ;;  %233 = vrot.lane.b32.xlu0 %v819_v21, %s677_s25 }
  0xbd   : > { %v835_v26 = vld [vmem:[#allocation2 + $0x48] sm:$0xff]  ;;  %v837_v27 = vld [vmem:[#allocation2 + $0x50] sm:$0xff]  ;;  %v841_v28 = vld [vmem:[#allocation2 + $0x58] sm:$0x3] }
  0xbe   : > { %235 = vrot.lane.b32.xlu1 %v823_v22, %s677_s25  ;;  %237 = vrot.lane.b32.xlu0 %v825_v23, %s677_s25 }
  0xc2   : > { %239 = vrot.lane.b32.xlu1 %v829_v24, %s677_s25  ;;  %241 = vrot.lane.b32.xlu0 %v831_v25, %s677_s25 }
  0xc6   : > { %243 = vrot.lane.b32.xlu1 %v835_v26, %s677_s25  ;;  %245 = vrot.lane.b32.xlu0 %v837_v27, %s677_s25 }
  0xca   : > { %247 = vrot.lane.b32.xlu1 %v841_v28, %s677_s25  ;;  %273 = vrot.lane.b32.xlu0 %v201_v13, %s678_s27 }
  0xce   : > { %275 = vrot.lane.b32.xlu1 %v202_v16, %s678_s27  ;;  %277 = vrot.lane.b32.xlu0 %v203_v17, %s678_s27 }
  0xd2   : > { %279 = vrot.lane.b32.xlu1 %v817_v20, %s678_s27  ;;  %281 = vrot.lane.b32.xlu0 %v819_v21, %s678_s27 }
  0xd6   : > { %283 = vrot.lane.b32.xlu1 %v823_v22, %s678_s27  ;;  %285 = vrot.lane.b32.xlu0 %v825_v23, %s678_s27 }
  0xda   : > { %287 = vrot.lane.b32.xlu1 %v829_v24, %s678_s27  ;;  %289 = vrot.lane.b32.xlu0 %v831_v25, %s678_s27 }
  0xde   : > { %291 = vrot.lane.b32.xlu1 %v835_v26, %s678_s27  ;;  %293 = vrot.lane.b32.xlu0 %v837_v27, %s678_s27 }
  0xe2   : > { %295 = vrot.lane.b32.xlu1 %v841_v28, %s678_s27 }
 0x124   : > { %v226_v29 = vpop.permute.xlu0 %225 }
 0x125   : > { %v261_v40 = vmax.f32 %v201_v13, %v226_v29 }
 0x128   : > { %v228_v30 = vpop.permute.xlu1 %227  ;;  %v230_v31 = vpop.permute.xlu0 %229 }
 0x129   : > { %v262_v44 = vmax.f32 %v202_v16, %v228_v30  ;;  %v263_v45 = vmax.f32 %v203_v17, %v230_v31 }
 0x12c   : > { %v232_v32 = vpop.permute.xlu1 %231  ;;  %v234_v33 = vpop.permute.xlu0 %233 }
 0x12d   : > { %v264_v55 = vmax.f32 %v817_v20, %v232_v32  ;;  %v265_v56 = vmax.f32 %v819_v21, %v234_v33 }
 0x130   : > { %v236_v34 = vpop.permute.xlu1 %235  ;;  %v238_v35 = vpop.permute.xlu0 %237 }
 0x131   : > { %v266_v2 = vmax.f32 %v823_v22, %v236_v34  ;;  %v267_v5 = vmax.f32 %v825_v23, %v238_v35 }
 0x134   : > { %v240_v36 = vpop.permute.xlu1 %239  ;;  %v242_v37 = vpop.permute.xlu0 %241 }
 0x135   : > { %v268_v15 = vmax.f32 %v829_v24, %v240_v36  ;;  %v269_v17 = vmax.f32 %v831_v25, %v242_v37 }
 0x138   : > { %v853_v38 = vpop.permute.xlu1 %243  ;;  %v855_v39 = vpop.permute.xlu0 %245 }
 0x13c   : > { %v857_v41 = vpop.permute.xlu1 %247  ;;  %v274_v42 = vpop.permute.xlu0 %273 }
 0x13d   : > { %v309_v43 = vmax.f32 %v261_v40, %v274_v42  ;;  %v270_v42 = vmax.f32 %v835_v26, %v853_v38 }
 0x13f   : > { %v334_v50 = vrot.slane %v309_v43, 1  ;;  %v371_v59 = vrot.slane %v309_v43, 2 }
 0x140   : > { %v276_v46 = vpop.permute.xlu1 %275  ;;  %v278_v47 = vpop.permute.xlu0 %277 }
 0x141   : > { %v310_v48 = vmax.f32 %v262_v44, %v276_v46  ;;  %v311_v49 = vmax.f32 %v263_v45, %v278_v47 }
 0x143   : > { %v335_v51 = vrot.slane %v310_v48, 1  ;;  %v372_v52 = vrot.slane %v310_v48, 2  ;;  %v337_v53 = vrot.slane %v311_v49, 1  ;;  %v374_v54 = vrot.slane %v311_v49, 2 }
 0x144   : > { %v280_v57 = vpop.permute.xlu1 %279  ;;  %v282_v58 = vpop.permute.xlu0 %281 }
 0x145   : > { %v336_v60 = vsel %vm333_vm3, %v334_v50, %v335_v51  ;;  %v338_v61 = vsel %vm333_vm3, %v335_v51, %v337_v53  ;;  %v312_v0 = vmax.f32 %v264_v55, %v280_v57  ;;  %v313_v1 = vmax.f32 %v265_v56, %v282_v58 }
 0x146   : > { %v362_v62 = vmax.f32 %v309_v43, %v336_v60  ;;  %v363_v63 = vmax.f32 %v310_v48, %v338_v61  ;;  %v373_v3 = vsel %vm370_vm4, %v371_v59, %v372_v52  ;;  %v375_v4 = vsel %vm370_vm4, %v372_v52, %v374_v54 }
 0x147   : > { %v339_v8 = vrot.slane %v312_v0, 1  ;;  %v376_v11 = vrot.slane %v312_v0, 2  ;;  %v340_v12 = vrot.slane %v313_v1, 1  ;;  %v377_v13 = vrot.slane %v313_v1, 2 }
 0x148   : > { %v399_v6 = vmax.f32 %v362_v62, %v373_v3  ;;  %v400_v7 = vmax.f32 %v363_v63, %v375_v4  ;;  %v284_v9 = vpop.permute.xlu1 %283  ;;  %v286_v10 = vpop.permute.xlu0 %285  ;;  %v271_v43 = vmax.f32 %v837_v27, %v855_v39  ;;  %v272_v27 = vmax.f32 %v841_v28, %v857_v41 }
 0x149   : > { %v314_v14 = vmax.f32 %v266_v2, %v284_v9  ;;  %v315_v16 = vmax.f32 %v267_v5, %v286_v10  ;;  %v341_v18 = vsel %vm333_vm3, %v339_v8, %v340_v12  ;;  %v378_v24 = vsel %vm370_vm4, %v376_v11, %v377_v13 }
 0x14a   : > { %408 = vst.msk [vmem:[%s870_s28] sm:$0xff] %vm407_vm5, %v399_v6  ;;  %409 = vst.msk [vmem:[%s870_s28 + $0x8] sm:$0xff] %vm407_vm5, %v400_v7  ;;  %v364_v21 = vmax.f32 %v312_v0, %v341_v18 }
 0x14b   : > { %v342_v19 = vrot.slane %v314_v14, 1  ;;  %v379_v20 = vrot.slane %v314_v14, 2  ;;  %v344_v25 = vrot.slane %v315_v16, 1  ;;  %v381_v47 = vrot.slane %v315_v16, 2 }
 0x14c   : > { %v288_v22 = vpop.permute.xlu1 %287  ;;  %v290_v23 = vpop.permute.xlu0 %289  ;;  %v401_v32 = vmax.f32 %v364_v21, %v378_v24 }
 0x14d   : > { %v343_v29 = vsel %vm333_vm3, %v340_v12, %v342_v19  ;;  %v316_v30 = vmax.f32 %v268_v15, %v288_v22  ;;  %v317_v31 = vmax.f32 %v269_v17, %v290_v23  ;;  %v380_v34 = vsel %vm370_vm4, %v377_v13, %v379_v20 }
 0x14e   : > { %v365_v33 = vmax.f32 %v313_v1, %v343_v29  ;;  %410 = vst.msk [vmem:[%s870_s28 + $0x10] sm:$0xff] %vm407_vm5, %v401_v32 }
 0x14f   : > { %v345_v35 = vrot.slane %v316_v30, 1  ;;  %v382_v36 = vrot.slane %v316_v30, 2  ;;  %v347_v37 = vrot.slane %v317_v31, 1  ;;  %v384_v40 = vrot.slane %v317_v31, 2 }
 0x150   : > { %v402_v44 = vmax.f32 %v365_v33, %v380_v34  ;;  %v292_v45 = vpop.permute.xlu1 %291  ;;  %v294_v46 = vpop.permute.xlu0 %293 }
 0x151   : > { %v346_v48 = vsel %vm333_vm3, %v344_v25, %v345_v35  ;;  %v348_v49 = vsel %vm333_vm3, %v345_v35, %v347_v37  ;;  %v318_v26 = vmax.f32 %v270_v42, %v292_v45  ;;  %v319_v38 = vmax.f32 %v271_v43, %v294_v46 }
 0x152   : > { %411 = vst.msk [vmem:[%s870_s28 + $0x18] sm:$0xff] %vm407_vm5, %v402_v44  ;;  %v366_v50 = vmax.f32 %v315_v16, %v346_v48  ;;  %v367_v51 = vmax.f32 %v316_v30, %v348_v49  ;;  %v383_v39 = vsel %vm370_vm4, %v381_v47, %v382_v36  ;;  %v385_v52 = vsel %vm370_vm4, %v382_v36, %v384_v40 }
 0x153   : > { %v349_v55 = vrot.slane %v318_v26, 1  ;;  %v386_v57 = vrot.slane %v318_v26, 2  ;;  %v350_v58 = vrot.slane %v319_v38, 1  ;;  %v387_v59 = vrot.slane %v319_v38, 2 }
 0x154   : > { %v403_v53 = vmax.f32 %v366_v50, %v383_v39  ;;  %v404_v54 = vmax.f32 %v367_v51, %v385_v52  ;;  %v296_v56 = vpop.permute.xlu1 %295 }
 0x155   : > { %v320_v60 = vmax.f32 %v272_v27, %v296_v56  ;;  %v351_v28 = vsel %vm333_vm3, %v349_v55, %v350_v58  ;;  %v388_v63 = vsel %vm370_vm4, %v386_v57, %v387_v59 }
 0x156   : > { %412 = vst.msk [vmem:[%s870_s28 + $0x20] sm:$0xff] %vm407_vm5, %v403_v53  ;;  %413 = vst.msk [vmem:[%s870_s28 + $0x28] sm:$0xff] %vm407_vm5, %v404_v54  ;;  %v368_v62 = vmax.f32 %v318_v26, %v351_v28 }
 0x157   : > { %v352_v41 = vrot.slane %v320_v60, 1  ;;  %v389_v61 = vrot.slane %v320_v60, 2 }
 0x158   : > { %v405_v1 = vmax.f32 %v368_v62, %v388_v63 }
 0x159   : > { %v353_v0 = vsel %vm333_vm3, %v350_v58, %v352_v41  ;;  %v390_v3 = vsel %vm370_vm4, %v387_v59, %v389_v61 }
 0x15a   : > { %v369_v2 = vmax.f32 %v319_v38, %v353_v0  ;;  %414 = vst.msk [vmem:[%s870_s28 + $0x30] sm:$0xff] %vm407_vm5, %v405_v1 }
 0x15c   : > { %v406_v4 = vmax.f32 %v369_v2, %v390_v3 }
 0x15e   : > { %415 = vst.msk [vmem:[%s870_s28 + $0x38] sm:$0xff] %vm407_vm5, %v406_v4 }
 0x15f   : > { %619 = shalt.err (!%p616_p10)
}
 0x160   : > { %s620_s20 = scalar_lea.hbm %s908_s5, 1024  ;;  %s624_s24 = scalar_lea.hbm %s958_s1, 2048 }
 0x161   : > { %p621_p0 = scmp.ne.s32.totalorder %s908_s5, %s620_s20  ;;  %p625_p1 = scmp.lt.s32.totalorder %s908_s5, %s958_s1 }
 0x162   : > { %p626_p3 = scmp.lt.s32.totalorder %s624_s24, %s620_s20 }
 0x163   : > { %p622_p2 = pnand %p621_p0, %p967_p12 }
 0x164   : > { %p627_p6 = por %p626_p3, %p625_p1 }
 0x165   : > { %p623_p9 = pneg %p622_p2 }
 0x167   : > { %p628_p11 = pnand %p627_p6, %p623_p9 }
 0x169   : > { %631 = shalt.err (!%p628_p11)
}
 0x16a   : > { %s680_s17 = smov 128   ;;  %s681_s25 = smov 8  }
 0x16b   : > { %526 = dma.vmem_to_hbm [thread:$0]  (%p967_p12), %s910_s2, 1024, %s908_s5, %s417_s10, %s680_s17, %s680_s17, %s681_s25  }
 0x16c PF: > { %s446_s27 = sand.u32 1, %s658_s6   ;;  %p968_p13 = scmp.ne.s32.totalorder %s964_s19, 0 }
 0x16d   : > { %p969_p4 = scmp.ge.s32.totalorder %s670_s9, 2  ;;  %s447_s28 = scalar_lea.sflag [#allocation6], %s446_s27 }
 0x16f   : > { %p533_p5 = pnand %p969_p4, %p968_p13 }
 0x171   : > { %p534_p7 = pneg %p533_p5 }
 0x173   : > { %653 = dma.done.wait (%p534_p7), %s447_s28, 1024  }
 0x174   : > { %655 = vsyncadd (%p534_p7), %s447_s28, 4294966272  ;;  %p14_p8 = scmp.ge.s32.totalorder %s717_s12, 4   ;;  %s970_s6 = smov %s662_s7 }
 0x175   : > { %s971_s7 = smov %s666_s8  ;;  %s972_s8 = smov %s729_s15 }
 0x176   : > { %s973_s9 = smov %s717_s12  ;;  %16 = sbr.rel (!%p14_p8) target bundleno = 5 (0x5), region = 69 }
 0x17b   :  { %452 = vsyncpa [#allocation5], 1 }
 0x17c   :  { %454 = vsyncpa [#allocation5 + $0x1], 1 }
 0x17d   :  { %455 = vsyncpa [#allocation6], 1 }
 0x17e   :  { %457 = vsyncpa [#allocation6 + $0x1], 1 }

</bundles_post_ra>
